<compile_context>
chip_gen: v5e
topology: v5e:2x2
jax: 0.10.0
libtpu: 0.0.40
codegen_flags: <defaults>
</compile_context>

<pallas_src>
import math

import jax
import jax.numpy as jnp
from jax.experimental import pallas as pl
from jax.experimental.pallas import tpu as pltpu

LANES = 128
SUBLANES = 8
SMOOTH = 0.01
NEG_PAD = -1e30  # sigmoid(NEG_PAD) == 0 exactly -> padded logits contribute nothing


def _round_up(a, b):
    return ((a + b - 1) // b) * b


def _dice_partial_kernel(x_ref, t_ref, acc_ref):
    """Accumulate per-row partial sums of [sigmoid(x)*t, sigmoid(x)^2, t^2].

    x_ref, t_ref : (1, TR, 128) tiles of logits / targets.
    acc_ref      : (1, 3, 8, 128) resident accumulator (one per (row, split)).
    """
    j = pl.program_id(2)

    @pl.when(j == 0)
    def _():
        acc_ref[...] = jnp.zeros_like(acc_ref)

    x = x_ref[0].astype(jnp.float32)      # (TR, 128) logits
    t = t_ref[0].astype(jnp.float32)      # (TR, 128) targets (already half-rounded)
    s = jax.nn.sigmoid(x)                 # EUP work, overlaps with DMA

    # (TR,128) -> (TR//8, 8, 128): layout-free reshape; sum over the leading
    # axis is pure elementwise vreg adds (no XLU).
    acc_ref[0, 0] += jnp.sum((s * t).reshape(-1, SUBLANES, LANES), axis=0)
    acc_ref[0, 1] += jnp.sum((s * s).reshape(-1, SUBLANES, LANES), axis=0)
    acc_ref[0, 2] += jnp.sum((t * t).reshape(-1, SUBLANES, LANES), axis=0)


def soft_dice_loss_binary(logits, targets, *, tile_rows=1024, num_core_splits=None):
    """Forward pass of SoftDiceLoss_binary (per-image rows = batch dim)."""
    B = logits.shape[0]
    n = math.prod(logits.shape[1:])

    r = -(-n // LANES)                         # rows of 128 lanes per image
    r = _round_up(max(r, 1), SUBLANES)
    tr = _round_up(min(tile_rows, r), SUBLANES)
    n_blocks = -(-r // tr)

    if num_core_splits is None:
        # Expose a parallel axis for v7x's 2nd TensorCore when B == 1; harmless
        # (size-1 axis) on single-TC chips / when B already parallelizes.
        num_core_splits = 2 if B == 1 else 1
    num_core_splits = max(1, min(num_core_splits, n_blocks))
    n_blocks = _round_up(n_blocks, num_core_splits)
    bps = n_blocks // num_core_splits          # blocks per split
    r_pad = n_blocks * tr
    n_pad = r_pad * LANES

    def prep(x, pad_value, half=False):
        x = x.reshape(B, n)                    # free reshape (metadata only)
        if half:
            # mirror `target.half()` from the PyTorch forward
            x = x.astype(jnp.float16).astype(jnp.float32)
        if n_pad > n:
            x = jnp.pad(x, ((0, 0), (0, n_pad - n)), constant_values=pad_value)
        return x.reshape(B, r_pad, LANES)

    x3 = prep(logits, NEG_PAD)                 # keep native dtype, cast in-kernel
    t3 = prep(targets, 0.0, half=True)

    partial = pl.pallas_call(
        _dice_partial_kernel,
        out_shape=jax.ShapeDtypeStruct(
            (B * num_core_splits, 3, SUBLANES, LANES), jnp.float32),
        grid_spec=pltpu.PrefetchScalarGridSpec(
            num_scalar_prefetch=0,
            grid=(B, num_core_splits, bps),
            in_specs=[
                pl.BlockSpec((1, tr, LANES), lambda b, c, j: (b, c * bps + j, 0)),
                pl.BlockSpec((1, tr, LANES), lambda b, c, j: (b, c * bps + j, 0)),
            ],
            out_specs=pl.BlockSpec(
                (1, 3, SUBLANES, LANES),
                lambda b, c, j: (b * num_core_splits + c, 0, 0, 0)),
        ),
        compiler_params=pltpu.CompilerParams(
            dimension_semantics=("parallel", "parallel", "arbitrary")),
    )(x3, t3)

    # Tiny epilogue in plain JAX: reduce (B*S, 3, 8, 128) -> (B, 3) and apply
    # the scalar dice formula + clamp from the reference module.
    sums = partial.reshape(B, num_core_splits, 3, SUBLANES * LANES).sum(axis=(1, 3))
    inter = sums[:, 0] + SMOOTH
    union = sums[:, 1] + sums[:, 2] + SMOOTH
    score = jnp.sum(2.0 * inter / union) / float(B)
    return 1.0 - jnp.clip(score, 0.0, 1.0 - 0.0001)


class SoftDiceLoss_binary:
    """Mirror of the PyTorch SoftDiceLoss_binary module."""

    def __init__(self):
        pass

    def __call__(self, input, target):
        return soft_dice_loss_binary(input, target)


def _reference(logits, targets):
    """Pure-JAX reference of the PyTorch forward."""
    B = logits.shape[0]
    s = jax.nn.sigmoid(logits.astype(jnp.float32)).reshape(B, -1)
    t = targets.astype(jnp.float16).astype(jnp.float32).reshape(B, -1)
    inter = jnp.sum(s * t, axis=1) + SMOOTH
    union = jnp.sum(s * s, axis=1) + jnp.sum(t * t, axis=1) + SMOOTH
    score = jnp.sum(2.0 * inter / union) / float(B)
    return 1.0 - jnp.clip(score, 0.0, 1.0 - 0.0001)


if __name__ == "__main__":
    key = jax.random.PRNGKey(0)
    k1, k2, k3, k4 = jax.random.split(key, 4)

    # Shapes consistent with the module's NCHW binary-segmentation usage.
    x = jax.random.normal(k1, (2, 4, 16, 16), dtype=jnp.float32)            # logits
    t = (jax.random.uniform(k2, (2, 4, 16, 16)) > 0.5).astype(jnp.float32)  # binary mask

    loss_mod = SoftDiceLoss_binary()
    loss = jax.block_until_ready(jax.jit(lambda a, b: loss_mod(a, b))(x, t))
    ref = _reference(x, t)
    assert jnp.allclose(loss, ref, atol=1e-5, rtol=1e-5), (loss, ref)

    # Ragged N (not a multiple of 8*128) and batch-size 1: exercises the
    # NEG_PAD logit padding and the core-split clamp.
    x2 = jax.random.normal(k3, (1, 3, 17, 19), dtype=jnp.float32)
    t2 = (jax.random.uniform(k4, (1, 3, 17, 19)) > 0.5).astype(jnp.float32)
    loss2 = jax.block_until_ready(soft_dice_loss_binary(x2, t2))
    ref2 = _reference(x2, t2)
    assert jnp.allclose(loss2, ref2, atol=1e-5, rtol=1e-5), (loss2, ref2)

    # Multi-block reduction + explicit 2-way core split (small tile to force it).
    x3 = jax.random.normal(k1, (1, 4, 32, 32), dtype=jnp.float32)
    t3 = (jax.random.uniform(k2, (1, 4, 32, 32)) > 0.5).astype(jnp.float32)
    loss3 = jax.block_until_ready(
        soft_dice_loss_binary(x3, t3, tile_rows=8, num_core_splits=2))
    ref3 = _reference(x3, t3)
    assert jnp.allclose(loss3, ref3, atol=1e-5, rtol=1e-5), (loss3, ref3)

    print("KERNEL_OK")
</pallas_src>

<mosaic_0001>
module attributes {stable_mosaic.version = 11 : i64} {
  func.func @_dice_partial_kernel(%arg0: i32, %arg1: i32, %arg2: i32, %arg3: memref<1x8x128xf32, #tpu.memory_space<vmem>>, %arg4: memref<1x8x128xf32, #tpu.memory_space<vmem>>, %arg5: memref<1x3x8x128xf32, #tpu.memory_space<vmem>>) attributes {dimension_semantics = [#tpu.dimension_semantics<parallel>, #tpu.dimension_semantics<parallel>, #tpu.dimension_semantics<arbitrary>], iteration_bounds = array<i64: 2, 1, 1>, scalar_prefetch = 0 : i64, scratch_operands = 0 : i64, tpu.core_type = #tpu.core_type<tc>, window_params = [{transform_indices = @transform_0, window_bounds = array<i64: 1, 8, 128>}, {transform_indices = @transform_1, window_bounds = array<i64: 1, 8, 128>}, {transform_indices = @transform_2, window_bounds = array<i64: 1, 3, 8, 128>}]} {
    %c0_i32 = arith.constant 0 : i32
    %0 = arith.cmpi eq, %arg2, %c0_i32 : i32
    %1 = arith.extui %0 : i1 to i32
    %c0_i32_0 = arith.constant 0 : i32
    %2 = arith.cmpi ne, %1, %c0_i32_0 : i32
    scf.if %2 {
      %cst_31 = arith.constant 0.000000e+00 : f32
      %39 = vector.broadcast %cst_31 : f32 to vector<1x3x8x128xf32>
      %c0_32 = arith.constant 0 : index
      %c0_33 = arith.constant 0 : index
      %c0_34 = arith.constant 0 : index
      %c0_35 = arith.constant 0 : index
      %40 = vector.load %arg5[%c0_32, %c0_33, %c0_34, %c0_35] : memref<1x3x8x128xf32, #tpu.memory_space<vmem>>, vector<1x3x8x128xf32>
      tpu.vector_store %arg5[%c0_32, %c0_33, %c0_34, %c0_35], %39 {strides = array<i32>} : memref<1x3x8x128xf32, #tpu.memory_space<vmem>>, vector<1x3x8x128xf32>,
    } else {
    }
    %c0 = arith.constant 0 : index
    %c0_1 = arith.constant 0 : index
    %c0_2 = arith.constant 0 : index
    %3 = vector.load %arg3[%c0, %c0_1, %c0_2] : memref<1x8x128xf32, #tpu.memory_space<vmem>>, vector<1x8x128xf32>
    %4 = vector.shape_cast %3 : vector<1x8x128xf32> to vector<8x128xf32>
    %c0_3 = arith.constant 0 : index
    %c0_4 = arith.constant 0 : index
    %c0_5 = arith.constant 0 : index
    %5 = vector.load %arg4[%c0_3, %c0_4, %c0_5] : memref<1x8x128xf32, #tpu.memory_space<vmem>>, vector<1x8x128xf32>
    %6 = vector.shape_cast %5 : vector<1x8x128xf32> to vector<8x128xf32>
    %7 = arith.negf %4 : vector<8x128xf32>
    %8 = math.exp %7 : vector<8x128xf32>
    %cst = arith.constant 1.000000e+00 : f32
    %9 = vector.broadcast %cst : f32 to vector<8x128xf32>
    %10 = arith.addf %9, %8 : vector<8x128xf32>
    %11 = arith.divf %9, %10 : vector<8x128xf32>
    %c0_6 = arith.constant 0 : index
    %c0_7 = arith.constant 0 : index
    %c0_8 = arith.constant 0 : index
    %c0_9 = arith.constant 0 : index
    %12 = vector.load %arg5[%c0_6, %c0_7, %c0_8, %c0_9] : memref<1x3x8x128xf32, #tpu.memory_space<vmem>>, vector<1x1x8x128xf32>
    %13 = vector.shape_cast %12 : vector<1x1x8x128xf32> to vector<8x128xf32>
    %14 = arith.mulf %11, %6 : vector<8x128xf32>
    %15 = vector.shape_cast %14 : vector<8x128xf32> to vector<1x8x128xf32>
    %cst_10 = arith.constant dense<0.000000e+00> : vector<8x128xf32>
    %16 = vector.multi_reduction <add>, %15, %cst_10 [0] : vector<1x8x128xf32> to vector<8x128xf32>
    %17 = arith.addf %13, %16 : vector<8x128xf32>
    %c0_11 = arith.constant 0 : index
    %c0_12 = arith.constant 0 : index
    %c0_13 = arith.constant 0 : index
    %c0_14 = arith.constant 0 : index
    %18 = vector.load %arg5[%c0_11, %c0_12, %c0_13, %c0_14] : memref<1x3x8x128xf32, #tpu.memory_space<vmem>>, vector<1x1x8x128xf32>
    %19 = vector.shape_cast %18 : vector<1x1x8x128xf32> to vector<8x128xf32>
    %20 = vector.shape_cast %17 : vector<8x128xf32> to vector<1x1x8x128xf32>
    tpu.vector_store %arg5[%c0_11, %c0_12, %c0_13, %c0_14], %20 {strides = array<i32>} : memref<1x3x8x128xf32, #tpu.memory_space<vmem>>, vector<1x1x8x128xf32>,
    %c0_15 = arith.constant 0 : index
    %c1 = arith.constant 1 : index
    %c0_16 = arith.constant 0 : index
    %c0_17 = arith.constant 0 : index
    %21 = vector.load %arg5[%c0_15, %c1, %c0_16, %c0_17] : memref<1x3x8x128xf32, #tpu.memory_space<vmem>>, vector<1x1x8x128xf32>
    %22 = vector.shape_cast %21 : vector<1x1x8x128xf32> to vector<8x128xf32>
    %23 = arith.mulf %11, %11 : vector<8x128xf32>
    %24 = vector.shape_cast %23 : vector<8x128xf32> to vector<1x8x128xf32>
    %cst_18 = arith.constant dense<0.000000e+00> : vector<8x128xf32>
    %25 = vector.multi_reduction <add>, %24, %cst_18 [0] : vector<1x8x128xf32> to vector<8x128xf32>
    %26 = arith.addf %22, %25 : vector<8x128xf32>
    %c0_19 = arith.constant 0 : index
    %c1_20 = arith.constant 1 : index
    %c0_21 = arith.constant 0 : index
    %c0_22 = arith.constant 0 : index
    %27 = vector.load %arg5[%c0_19, %c1_20, %c0_21, %c0_22] : memref<1x3x8x128xf32, #tpu.memory_space<vmem>>, vector<1x1x8x128xf32>
    %28 = vector.shape_cast %27 : vector<1x1x8x128xf32> to vector<8x128xf32>
    %29 = vector.shape_cast %26 : vector<8x128xf32> to vector<1x1x8x128xf32>
    tpu.vector_store %arg5[%c0_19, %c1_20, %c0_21, %c0_22], %29 {strides = array<i32>} : memref<1x3x8x128xf32, #tpu.memory_space<vmem>>, vector<1x1x8x128xf32>,
    %c0_23 = arith.constant 0 : index
    %c2 = arith.constant 2 : index
    %c0_24 = arith.constant 0 : index
    %c0_25 = arith.constant 0 : index
    %30 = vector.load %arg5[%c0_23, %c2, %c0_24, %c0_25] : memref<1x3x8x128xf32, #tpu.memory_space<vmem>>, vector<1x1x8x128xf32>
    %31 = vector.shape_cast %30 : vector<1x1x8x128xf32> to vector<8x128xf32>
    %32 = arith.mulf %6, %6 : vector<8x128xf32>
    %33 = vector.shape_cast %32 : vector<8x128xf32> to vector<1x8x128xf32>
    %cst_26 = arith.constant dense<0.000000e+00> : vector<8x128xf32>
    %34 = vector.multi_reduction <add>, %33, %cst_26 [0] : vector<1x8x128xf32> to vector<8x128xf32>
    %35 = arith.addf %31, %34 : vector<8x128xf32>
    %c0_27 = arith.constant 0 : index
    %c2_28 = arith.constant 2 : index
    %c0_29 = arith.constant 0 : index
    %c0_30 = arith.constant 0 : index
    %36 = vector.load %arg5[%c0_27, %c2_28, %c0_29, %c0_30] : memref<1x3x8x128xf32, #tpu.memory_space<vmem>>, vector<1x1x8x128xf32>
    %37 = vector.shape_cast %36 : vector<1x1x8x128xf32> to vector<8x128xf32>
    %38 = vector.shape_cast %35 : vector<8x128xf32> to vector<1x1x8x128xf32>
    tpu.vector_store %arg5[%c0_27, %c2_28, %c0_29, %c0_30], %38 {strides = array<i32>} : memref<1x3x8x128xf32, #tpu.memory_space<vmem>>, vector<1x1x8x128xf32>,
    return
  }
  func.func @transform_0(%arg0: i32, %arg1: i32, %arg2: i32) -> (i32, i32, i32) {
    %c1_i32 = arith.constant 1 : i32
    %0 = arith.muli %arg1, %c1_i32 : i32
    %1 = arith.addi %0, %arg2 : i32
    %c0_i32 = arith.constant 0 : i32
    %c0_i32_0 = arith.constant 0 : i32
    return %arg0, %1, %c0_i32 : i32, i32, i32
  }
  func.func @transform_1(%arg0: i32, %arg1: i32, %arg2: i32) -> (i32, i32, i32) {
    %c1_i32 = arith.constant 1 : i32
    %0 = arith.muli %arg1, %c1_i32 : i32
    %1 = arith.addi %0, %arg2 : i32
    %c0_i32 = arith.constant 0 : i32
    %c0_i32_0 = arith.constant 0 : i32
    return %arg0, %1, %c0_i32 : i32, i32, i32
  }
  func.func @transform_2(%arg0: i32, %arg1: i32, %arg2: i32) -> (i32, i32, i32, i32) {
    %c1_i32 = arith.constant 1 : i32
    %0 = arith.muli %arg0, %c1_i32 : i32
    %1 = arith.addi %0, %arg1 : i32
    %c0_i32 = arith.constant 0 : i32
    %c0_i32_0 = arith.constant 0 : i32
    %c0_i32_1 = arith.constant 0 : i32
    %c0_i32_2 = arith.constant 0 : i32
    return %1, %c0_i32, %c0_i32_0, %c0_i32_1 : i32, i32, i32, i32
  }
}

</mosaic_0001>

<bundles_post_ra>
// kernel: _lambda_.1
= control target key start
LH: loop header
LB: loop body
LE: loop exit
PB: predicated region body
PF: predicated region fallthrough
CT: control target
= control target key end

     0   :  { %s435_s9 = smov 0   ;;  %s437_s10 = smov 0   ;;  %s471_s0 = inlined_call_operand.vmem [shape: f32[2,8,128], index: 0, kind: input, shape index: {}]   ;;  %s472_s1 = inlined_call_operand.vmem [shape: f32[2,8,128], index: 1, kind: input, shape index: {}]   ;;  %s473_s2 = inlined_call_operand.vmem [shape: f32[2,3,8,128], index: 2, kind: output, shape index: {}]  }
   0x1   :  { %s439_s11 = smov 0  }
   0x2 LB: > { %s31_s12 = sadd.s32 1, %s414_s10  ;;  %p355_p0 = scmp.ge.s32.totalorder %s418_s11, 1  ;;  %s418_s11 = sphi %s439_s11, %s12_s11   ;;  %s414_s10 = sphi %s437_s10, %s475_s10   ;;  %s410_s9 = sphi %s435_s9, %s474_s9  }
   0x3   : > { %p33_p1 = scmp.ge.s32.totalorder %s31_s12, 2  ;;  %p159_p2 = scmp.lt.s32.totalorder %s418_s11, 3 }
   0x5   : > { %s477_s12 = smov (%p33_p1, %s31_s12), 0  ;;  %p160_p3 = pnand %p355_p0, %p159_p2 }
   0x6   : > { %p194_p4 = scmp.lt.s32.totalorder (!%p160_p3), %s410_s9, 1 }
   0x7   : > { %163 = sbr.rel (%p160_p3) target bundleno = 48 (0x30), region = 28 }
   0xc   : > { %s479_s9 = smov (!%p194_p4, %s410_s9), 1 }
   0xd   : > { %s366_s13 = smul.u32 24, %s479_s9  ;;  %s356_s14 = sshll.u32 %s479_s9, 3 }
   0xe   : > { %s200_s17 = scalar_lea.vmem %s471_s0, %s356_s14  ;;  %s209_s20 = scalar_lea.vmem %s472_s1, %s356_s14 }
   0xf   : > { %v225_v0 = vld [vmem:[%s200_s17] sm:$0xff]  ;;  %s216_s23 = scalar_lea.vmem %s473_s2, %s366_s13 }
  0x10   : > { %v226_v1 = vld [vmem:[%s209_s20] sm:$0xff]  ;;  %v359_v2 = vmul.f32 -1.442695, %v225_v0 }
  0x11   : > { %v259_v3 = vmul.f32 %v226_v1, %v226_v1 }
  0x12   : > { %392 = vpow2.f32 %v359_v2 }
  0x13   : > { %363 = vst [vmem:[%s216_s23 + $0x10] sm:$0xff] %v259_v3 }
  0x18   : > { %v393_v4 = vpop.eup %392 }
  0x19   : > { %v230_v5 = vadd.f32 1.0, %v393_v4 }
  0x1b   : > { %394 = vrcp.f32 %v230_v5  ;;  %v242_v8 = vand.u32 2147483648, %v230_v5  ;;  %vm236_vm0 = vweird.f32 %v230_v5  ;;  %v240_v10 = vand.u32 2147483647, %v230_v5 }
  0x1d   : > { %v243_v12 = vor.u32 1.1754944e-38, %v242_v8  ;;  %vm241_vm3 = vcmp.eq.f32.partialorder %v240_v10, 8.507059e+37 }
  0x21   : > { %v395_v6 = vpop.eup %394 }
  0x22   : > { %v232_v7 = vmul.f32 %v395_v6, %v230_v5  ;;  %vm237_vm1 = vweird.f32 %v395_v6 }
  0x23   : > { %vm238_vm2 = vmor %vm236_vm0, %vm237_vm1 }
  0x24   : > { %v233_v9 = vsub.f32 1.0, %v232_v7 }
  0x26   : > { %v234_v11 = vmul.f32 %v395_v6, %v233_v9 }
  0x28   : > { %v235_v13 = vadd.f32 %v395_v6, %v234_v11 }
  0x2a   : > { %v239_v14 = vsel %vm238_vm2, %v395_v6, %v235_v13 }
  0x2b   : > { %v244_v15 = vsel %vm241_vm3, %v243_v12, %v239_v14 }
  0x2c   : > { %v247_v16 = vmul.f32 %v244_v15, %v226_v1  ;;  %v253_v17 = vmul.f32 %v244_v15, %v244_v15 }
  0x2e   : > { %250 = vst [vmem:[%s216_s23] sm:$0xff] %v247_v16 }
  0x2f   : > { %361 = vst [vmem:[%s216_s23 + $0x8] sm:$0xff] %v253_v17 }
  0x30 PF: > { %s12_s11 = sadd.s32 1, %s418_s11   ;;  %s474_s9 = smov %s414_s10 }
  0x31   : > { %p9_p5 = scmp.ge.s32.totalorder %s12_s11, 4   ;;  %s475_s10 = smov %s477_s12 }
  0x33   :  { %11 = sbr.rel (!%p9_p5) target bundleno = 2 (0x2), region = 67 }

</bundles_post_ra>
